<compile_context>
chip_gen: v7x
topology: tpu7x:2x2x1
jax: 0.10.0
libtpu: 0.0.40
codegen_flags: <defaults>
</compile_context>

<pallas_src>
import jax
import jax.numpy as jnp
from jax.experimental import pallas as pl
from jax.experimental.pallas import tpu as pltpu


def _round_up(a: int, m: int) -> int:
    return (a + m - 1) // m * m


def _fused_kernel(x_ref, w_ref, b_ref, o_ref, acc_ref):
    """One (batch-tile, V-tile) step of y = sigmoid(x @ w_eff + b_eff)."""
    k = pl.program_id(1)

    @pl.when(k == 0)
    def _init():
        acc_ref[...] = jnp.zeros_like(acc_ref)

    # bf16 tiles in VMEM/HBM, f32 math in vregs.
    xb = x_ref[...].astype(jnp.float32)            # (TILE_B, TILE_V)
    wr = w_ref[...].astype(jnp.float32)            # (1, TILE_V) -> broadcast
    acc_ref[...] += jnp.sum(xb * wr, axis=-1, keepdims=True)   # VPU + XLU

    @pl.when(k == pl.num_programs(1) - 1)
    def _finalize():
        z = acc_ref[...] + b_ref[0]                # SMEM scalar bias
        o_ref[...] = jax.nn.sigmoid(z).astype(o_ref.dtype)


def sentiment_forward(x, w1, b1, w2, b2, *, tile_b=128, tile_v=4096):
    """Forward pass of SentimentNetwork.

    x : (B, V) float  -- 0/1 bag-of-words indicator rows
    w1: (V, H), b1: (1, H)   (transpose of nn.Linear.weight layout)
    w2: (H, 1), b2: (1, 1)
    returns (B, 1) float32 probabilities.
    """
    B, V = x.shape

    # --- Exact algebraic fold of fc2 into fc1 (no activation in between). ---
    w_eff = jnp.dot(w1.astype(jnp.float32), w2.astype(jnp.float32),
                    preferred_element_type=jnp.float32)            # (V, 1)
    w_row = w_eff.reshape(1, V)                                    # (1, V)
    b_eff = (jnp.dot(b1.astype(jnp.float32), w2.astype(jnp.float32))
             + b2.astype(jnp.float32)).reshape(1)                  # (1,)

    # --- Hardware-friendly tiling / padding. ---
    tb = min(tile_b, _round_up(B, 8))        # sublane multiple of 8
    tv = min(tile_v, _round_up(V, 128))      # lane multiple of 128
    b_pad = _round_up(B, tb)
    v_pad = _round_up(V, tv)

    x_bf = x.astype(jnp.bfloat16)            # 0/1 indicator: bf16 is exact
    if (b_pad, v_pad) != (B, V):
        x_bf = jnp.pad(x_bf, ((0, b_pad - B), (0, v_pad - V)))
    if v_pad != V:
        w_row = jnp.pad(w_row, ((0, 0), (0, v_pad - V)))

    grid = (b_pad // tb, v_pad // tv)

    cost = pl.CostEstimate(
        flops=2 * b_pad * v_pad,
        transcendentals=b_pad,
        bytes_accessed=x_bf.size * 2 + w_row.size * 4 * grid[0] + b_pad * 4,
    )

    out = pl.pallas_call(
        _fused_kernel,
        out_shape=jax.ShapeDtypeStruct((b_pad, 1), jnp.float32),
        grid_spec=pltpu.PrefetchScalarGridSpec(
            num_scalar_prefetch=0,
            grid=grid,
            in_specs=[
                pl.BlockSpec((tb, tv), lambda i, k: (i, k)),        # x tile
                pl.BlockSpec((1, tv), lambda i, k: (0, k)),         # w_eff row
                pl.BlockSpec(memory_space=pltpu.MemorySpace.SMEM),  # b_eff
            ],
            out_specs=pl.BlockSpec((tb, 1), lambda i, k: (i, 0)),
            scratch_shapes=[pltpu.VMEM((tb, 1), jnp.float32)],
        ),
        compiler_params=pltpu.CompilerParams(
            dimension_semantics=("parallel", "arbitrary"),
        ),
        cost_estimate=cost,
    )(x_bf, w_row, b_eff)

    return out[:B]


def init_params(key, vocab_size, hidden_nodes, output_nodes=1):
    """Deterministic init mimicking nn.Linear default (U[-1/sqrt(fan_in), +])."""
    k1, k2, k3, k4 = jax.random.split(key, 4)
    bound1 = 1.0 / jnp.sqrt(float(vocab_size))
    bound2 = 1.0 / jnp.sqrt(float(hidden_nodes))
    w1 = jax.random.uniform(k1, (vocab_size, hidden_nodes), jnp.float32,
                            minval=-bound1, maxval=bound1)
    b1 = jax.random.uniform(k2, (1, hidden_nodes), jnp.float32,
                            minval=-bound1, maxval=bound1)
    w2 = jax.random.uniform(k3, (hidden_nodes, output_nodes), jnp.float32,
                            minval=-bound2, maxval=bound2)
    b2 = jax.random.uniform(k4, (1, output_nodes), jnp.float32,
                            minval=-bound2, maxval=bound2)
    return w1, b1, w2, b2


def _reference(x, w1, b1, w2, b2):
    # Plain-JAX two-layer reference with the original (unfused) math.
    return jax.nn.sigmoid((x @ w1 + b1) @ w2 + b2)


if __name__ == "__main__":
    # Small synthetic shapes consistent with the module:
    #   vocab_size (= len(review_vocab)) -> 256, hidden_nodes -> 32.
    V, H = 256, 32
    key = jax.random.PRNGKey(0)
    k_x1, k_x2, k_p = jax.random.split(key, 3)
    w1, b1, w2, b2 = init_params(k_p, V, H, 1)

    # Test 1: tiny batch, single-block path (grid = (1, 1)).
    B1 = 2
    x1 = (jax.random.uniform(k_x1, (B1, V)) < 0.1).astype(jnp.float32)
    out1 = jax.block_until_ready(sentiment_forward(x1, w1, b1, w2, b2))
    ref1 = _reference(x1, w1, b1, w2, b2)
    assert out1.shape == (B1, 1)
    assert jnp.allclose(out1, ref1, atol=1e-4, rtol=1e-4)

    # Test 2: force small tiles to exercise batch tiling, K accumulation and
    # padding/slicing (grid = (2, 2)).
    B2 = 10
    x2 = (jax.random.uniform(k_x2, (B2, V)) < 0.1).astype(jnp.float32)
    out2 = jax.block_until_ready(
        sentiment_forward(x2, w1, b1, w2, b2, tile_b=8, tile_v=128))
    ref2 = _reference(x2, w1, b1, w2, b2)
    assert out2.shape == (B2, 1)
    assert jnp.allclose(out2, ref2, atol=1e-4, rtol=1e-4)

    print("KERNEL_OK")
</pallas_src>

<mosaic_0001>
module attributes {stable_mosaic.version = 11 : i64} {
  func.func @_fused_kernel(%arg0: i32, %arg1: i32, %arg2: memref<8x256xbf16, #tpu.memory_space<vmem>>, %arg3: memref<1x256xf32, #tpu.memory_space<vmem>>, %arg4: memref<1xf32, #tpu.memory_space<smem>>, %arg5: memref<8x1xf32, #tpu.memory_space<vmem>>, %arg6: memref<8x1xf32, #tpu.memory_space<vmem>>) attributes {dimension_semantics = [#tpu.dimension_semantics<parallel>, #tpu.dimension_semantics<arbitrary>], iteration_bounds = array<i64: 1, 1>, scalar_prefetch = 0 : i64, scratch_operands = 1 : i64, tpu.core_type = #tpu.core_type<tc>, window_params = [{transform_indices = @transform_0, window_bounds = array<i64: 8, 256>}, {transform_indices = @transform_1, window_bounds = array<i64: 1, 256>}, {transform_indices = @transform_2, window_bounds = array<i64: 1>}, {transform_indices = @transform_3, window_bounds = array<i64: 8, 1>}]} {
    %c0_i32 = arith.constant 0 : i32
    %0 = arith.cmpi eq, %arg1, %c0_i32 : i32
    %1 = arith.extui %0 : i1 to i32
    %c0_i32_0 = arith.constant 0 : i32
    %2 = arith.cmpi ne, %1, %c0_i32_0 : i32
    scf.if %2 {
      %cst_10 = arith.constant 0.000000e+00 : f32
      %16 = vector.broadcast %cst_10 : f32 to vector<8x1xf32>
      %c0_11 = arith.constant 0 : index
      %c0_12 = arith.constant 0 : index
      %17 = vector.load %arg6[%c0_11, %c0_12] : memref<8x1xf32, #tpu.memory_space<vmem>>, vector<8x1xf32>
      tpu.vector_store %arg6[%c0_11, %c0_12], %16 {strides = array<i32>} : memref<8x1xf32, #tpu.memory_space<vmem>>, vector<8x1xf32>,
    } else {
    }
    %c0 = arith.constant 0 : index
    %c0_1 = arith.constant 0 : index
    %3 = vector.load %arg2[%c0, %c0_1] : memref<8x256xbf16, #tpu.memory_space<vmem>>, vector<8x256xbf16>
    %4 = arith.extf %3 : vector<8x256xbf16> to vector<8x256xf32>
    %c0_2 = arith.constant 0 : index
    %c0_3 = arith.constant 0 : index
    %5 = vector.load %arg3[%c0_2, %c0_3] : memref<1x256xf32, #tpu.memory_space<vmem>>, vector<1x256xf32>
    %c0_4 = arith.constant 0 : index
    %c0_5 = arith.constant 0 : index
    %6 = vector.load %arg6[%c0_4, %c0_5] : memref<8x1xf32, #tpu.memory_space<vmem>>, vector<8x1xf32>
    %7 = vector.broadcast %5 : vector<1x256xf32> to vector<8x256xf32>
    %8 = arith.mulf %4, %7 : vector<8x256xf32>
    %cst = arith.constant dense<0.000000e+00> : vector<8xf32>
    %9 = vector.multi_reduction <add>, %8, %cst [1] : vector<8x256xf32> to vector<8xf32>
    %10 = vector.shape_cast %9 : vector<8xf32> to vector<8x1xf32>
    %11 = arith.addf %6, %10 : vector<8x1xf32>
    %c0_6 = arith.constant 0 : index
    %c0_7 = arith.constant 0 : index
    %12 = vector.load %arg6[%c0_6, %c0_7] : memref<8x1xf32, #tpu.memory_space<vmem>>, vector<8x1xf32>
    tpu.vector_store %arg6[%c0_6, %c0_7], %11 {strides = array<i32>} : memref<8x1xf32, #tpu.memory_space<vmem>>, vector<8x1xf32>,
    %c0_i32_8 = arith.constant 0 : i32
    %13 = arith.cmpi eq, %arg1, %c0_i32_8 : i32
    %14 = arith.extui %13 : i1 to i32
    %c0_i32_9 = arith.constant 0 : i32
    %15 = arith.cmpi ne, %14, %c0_i32_9 : i32
    scf.if %15 {
      %c0_10 = arith.constant 0 : index
      %c0_11 = arith.constant 0 : index
      %16 = vector.load %arg6[%c0_10, %c0_11] : memref<8x1xf32, #tpu.memory_space<vmem>>, vector<8x1xf32>
      %c0_12 = arith.constant 0 : index
      %17 = memref.load %arg4[%c0_12] : memref<1xf32, #tpu.memory_space<smem>>
      %18 = vector.broadcast %17 : f32 to vector<8x1xf32>
      %19 = arith.addf %16, %18 : vector<8x1xf32>
      %20 = arith.negf %19 : vector<8x1xf32>
      %21 = math.exp %20 : vector<8x1xf32>
      %cst_13 = arith.constant 1.000000e+00 : f32
      %22 = vector.broadcast %cst_13 : f32 to vector<8x1xf32>
      %23 = arith.addf %22, %21 : vector<8x1xf32>
      %24 = arith.divf %22, %23 : vector<8x1xf32>
      %c0_14 = arith.constant 0 : index
      %c0_15 = arith.constant 0 : index
      %25 = vector.load %arg5[%c0_14, %c0_15] : memref<8x1xf32, #tpu.memory_space<vmem>>, vector<8x1xf32>
      tpu.vector_store %arg5[%c0_14, %c0_15], %24 {strides = array<i32>} : memref<8x1xf32, #tpu.memory_space<vmem>>, vector<8x1xf32>,
    } else {
    }
    return
  }
  func.func @transform_0(%arg0: i32, %arg1: i32) -> (i32, i32) {
    %c0_i32 = arith.constant 0 : i32
    return %arg0, %arg1 : i32, i32
  }
  func.func @transform_1(%arg0: i32, %arg1: i32) -> (i32, i32) {
    %c0_i32 = arith.constant 0 : i32
    %c0_i32_0 = arith.constant 0 : i32
    return %c0_i32, %arg1 : i32, i32
  }
  func.func @transform_2(%arg0: i32, %arg1: i32) -> i32 {
    %c0_i32 = arith.constant 0 : i32
    %c0_i32_0 = arith.constant 0 : i32
    return %c0_i32 : i32
  }
  func.func @transform_3(%arg0: i32, %arg1: i32) -> (i32, i32) {
    %c0_i32 = arith.constant 0 : i32
    %c0_i32_0 = arith.constant 0 : i32
    return %arg0, %c0_i32 : i32, i32
  }
}

</mosaic_0001>

<bundles_post_ra>
// kernel: tpu_custom_call.1
= control target key start
LH: loop header
LB: loop body
LE: loop exit
PB: predicated region body
PF: predicated region fallthrough
CT: control target
= control target key end

     0   :  { %9 = vsyncpa [#allocation5], 0  ;;  %s107_s12 = smov [#allocation4]   ;;  %s153_s0 = inlined_call_operand.hbm [shape: bf16[8,256], index: 0, kind: input, shape index: {}]   ;;  %s154_s1 = inlined_call_operand.vmem [shape: f32[1,256], index: 1, kind: input, shape index: {}]   ;;  %s155_s2 = inlined_call_operand.<no memory space> [shape: f32[1], index: 2, kind: input, shape index: {}]   ;;  %s156_s3 = inlined_call_operand.vmem [shape: f32[8,1], index: 3, kind: output, shape index: {}]  }
   0x1   :  { %s16_s13 = sshll.u32 %s107_s12, 4  ;;  %s83_s16 = scalar_lea.hbm %s153_s0, 128  ;;  %s17_s13 = int_to_ptr.vmem [resolvable:$true] %s16_s13 }
   0x2   :  { %p84_p0 = scmp.ne.s32.totalorder %s153_s0, %s83_s16  ;;  %p87_p1 = scmp.lt.u32.totalorder %s83_s16, %s153_s0 }
   0x4   :  { %p89_p2 = pnand %p87_p1, %p84_p0 }
   0x6   :  { %92 = shalt.err (!%p89_p2)
}
   0x7   :  { %s93_s21 = scalar_lea.vmem %s17_s13, 128  ;;  %p98_p4 = scmp.lt.s32.totalorder %s17_s13, %s17_s13 }
   0x8   :  { %p94_p3 = scmp.ne.s32.totalorder %s17_s13, %s93_s21  ;;  %p99_p5 = scmp.lt.s32.totalorder %s93_s21, %s93_s21 }
   0xa   :  { %p100_p6 = por %p99_p5, %p98_p4 }
   0xc   :  { %p101_p7 = pnand %p100_p6, %p94_p3 }
   0xe   :  { %104 = shalt.err (!%p101_p7)
}
   0xf   :  { %19 = dma.hbm_to_vmem [thread:$0]  %s153_s0, 128, %s17_s13, [#allocation5]  }
  0x10   :  { %105 = dma.done.wait [#allocation5], 128  }
  0x11   :  { %106 = vsyncadd [#allocation5], 4294967168  ;;  %vm31_vm0 = vcmask 7168   ;;  %v39_v0 = vlaneseq  ;;  %v108_v1 = vmov 0.0   ;;  %v33_v5 = vld [vmem:[#allocation4] sm:$0xff]  ;;  %v62_v17 = vstv %s155_s2 }
  0x12   :  { %32 = vst.msk [vmem:[#allocation2] sm:$0xff] %vm31_vm0, %v108_v1  ;;  %v36_v6 = vld [vmem:[%s154_s1] sm:$0x3]  ;;  %v34_v7 = vunpack.c.l.bf16 %v33_v5  ;;  %v35_v8 = vunpack.c.h.bf16 %v33_v5 }
  0x13   :  { %v40_v2 = vshrl.u32 %v39_v0, 7 }
  0x15   :  { %v41_v3 = vsub.s32 0, %v40_v2  ;;  %v45_v4 = vsub.s32 1, %v40_v2 }
  0x17   :  { %v42_v9 = vrot.slane %v36_v6, %v41_v3  ;;  %v46_v10 = vrot.slane %v36_v6, %v45_v4 }
  0x19   :  { %v49_v11 = vmul.f32 %v42_v9, %v34_v7  ;;  %v50_v12 = vmul.f32 %v46_v10, %v35_v8  ;;  %v37_v14 = vld [vmem:[#allocation2] sm:$0xff] }
  0x1b   :  { %v51_v13 = vadd.f32 %v50_v12, %v49_v11 }
  0x1d   :  { %52 = vadd.xlane.f32.xlu0 %v51_v13 }
  0xaa   :  { %v53_v15 = vpop.xlane.xlu0 %52 }
  0xab   :  { %v54_v16 = vadd.f32 %v53_v15, %v37_v14 }
  0xad   :  { %56 = vst.msk [vmem:[#allocation2] sm:$0xff] %vm31_vm0, %v54_v16 }
  0xb4   :  { %v60_v18 = vld [vmem:[#allocation2] sm:$0xff] }
  0xb5   :  { %v63_v19 = vadd.f32 %v62_v17, %v60_v18 }
  0xb7   :  { %v76_v20 = vmul.f32 -1.442695, %v63_v19 }
  0xb9   :  { %79 = vpow2.f32 %v76_v20 }
  0xc3   :  { %v80_v21 = vpop.eup %79 }
  0xc4   :  { %v67_v22 = vadd.f32 1.0, %v80_v21 }
  0xc6   :  { %81 = vrcp.f32 %v67_v22 }
  0xd0   :  { %v82_v23 = vpop.eup %81 }
  0xd1   :  { %70 = vst.msk [vmem:[%s156_s3] sm:$0xff] %vm31_vm0, %v82_v23 }
  0xd2   :  { %75 = vsyncpa [#allocation5], 1 }

</bundles_post_ra>
